<compile_context>
chip_gen: v6e
topology: v6e:2x2x1
jax: 0.10.0
libtpu: 0.0.40
codegen_flags: <defaults>
</compile_context>

<pallas_src>
import jax
import jax.numpy as jnp
import numpy as np
from jax.experimental import pallas as pl
from jax.experimental.pallas import tpu as pltpu


# ----------------------------------------------------------------------------
# Kernel
# ----------------------------------------------------------------------------
def wf_kernel(x_ref, res_ref, w_ref, o_ref):
    """One (batch, row-tile) step of WF.

    x_ref  : (1, H,   W, Cd)      full-resident low-res feature
    res_ref: (1, TH2, 2, W, Cin)  row tile of skip feature, parity-split width
    w_ref  : (Cin, Cd)            1x1 conv weight (channel matmul), resident
    o_ref  : (1, TH2, 2, W, Cd)   row tile of output, parity-split width
    """
    th2 = o_ref.shape[1]                 # output rows in this tile
    tin = th2 // 2                       # input rows feeding this tile
    h = x_ref.shape[1]
    w_in = x_ref.shape[2]
    cd = x_ref.shape[3]
    cin = w_ref.shape[0]

    t = pl.program_id(1)
    k0 = pl.multiple_of(t * tin, tin)    # first input row of this tile

    # ---- 1x1 conv on the skip connection (MXU, bf16 operands, f32 accum) ----
    # (TH2, 2, W, Cin) -> (TH2*2*W, Cin): collapses only leading dims into the
    # sublane axis (W is a multiple of 8 at real sizes), so no relayout.
    r2 = res_ref[0].reshape(th2 * 2 * w_in, cin)
    y = jnp.dot(r2, w_ref[...], preferred_element_type=jnp.float32)
    y = y.reshape(th2, 2, w_in, cd)

    # ---- bilinear x2 upsample of x (align_corners=False), f32 exact ----------
    # Row blend: out[2k] = .25*x[k-1] + .75*x[k]; out[2k+1] = .75*x[k] + .25*x[k+1]
    # with neighbours clamped at the image border.  x is fully resident, so the
    # one-row halo is just a clamped dynamic slice (no inter-tile traffic).
    cur = x_ref[0, pl.ds(k0, tin)].astype(jnp.float32)                     # x[k0 .. k0+tin-1]
    row_lo = x_ref[0, pl.ds(jnp.maximum(k0 - 1, 0), 1)].astype(jnp.float32)
    row_hi = x_ref[0, pl.ds(jnp.minimum(k0 + tin, h - 1), 1)].astype(jnp.float32)
    prv = jnp.concatenate([row_lo, cur[: tin - 1]], axis=0)                # x[k-1] (clamped)
    nxt = jnp.concatenate([cur[1:], row_hi], axis=0)                       # x[k+1] (clamped)
    ev_r = 0.25 * prv + 0.75 * cur                                         # even output rows
    od_r = 0.75 * cur + 0.25 * nxt                                         # odd output rows
    # Interleave rows: (tin, 2, W, Cd) -> (TH2, W, Cd). Leading-dim reshape only.
    up_h = jnp.concatenate([ev_r[:, None], od_r[:, None]], axis=1)
    up_h = up_h.reshape(th2, w_in, cd)

    # Column blend (same fixed weights along W); edge clamp folded into concats.
    p_c = jnp.concatenate([up_h[:, :1, :], up_h[:, : w_in - 1, :]], axis=1)
    n_c = jnp.concatenate([up_h[:, 1:, :], up_h[:, w_in - 1:, :]], axis=1)
    ev_c = 0.25 * p_c + 0.75 * up_h                                        # even output cols
    od_c = 0.75 * up_h + 0.25 * n_c                                        # odd output cols
    up = jnp.concatenate([ev_c[:, None], od_c[:, None]], axis=1)           # (TH2, 2, W, Cd)

    o_ref[0] = (y + up).astype(o_ref.dtype)


# ----------------------------------------------------------------------------
# Wrapper
# ----------------------------------------------------------------------------
def _default_row_tile(h: int) -> int:
    """Input-row tile (output tile = 2x this).  ~32 output rows keeps the
    double-buffered res/out tiles well inside v7x's 64 MiB VMEM at 128 ch."""
    for cand in (16, 8, 4, 2):
        if h % cand == 0:
            return cand
    return h


def wf_forward(x_nchw, res_nchw, w_conv, *, row_tile=None,
               conv_dtype=jnp.bfloat16):
    """WF forward.  x_nchw: (B, Cd, H, W); res_nchw: (B, Cin, 2H, 2W);
    w_conv: (Cd, Cin, 1, 1) PyTorch Conv2d weight (bias-free).
    Returns (B, Cd, 2H, 2W) in x_nchw.dtype."""
    B, Cd, H, W = x_nchw.shape
    Br, Cin, H2, W2 = res_nchw.shape
    assert Br == B and H2 == 2 * H and W2 == 2 * W
    assert w_conv.shape == (Cd, Cin, 1, 1)
    assert W >= 2

    tin = row_tile if row_tile is not None else _default_row_tile(H)
    assert tin >= 2 and H % tin == 0, "row_tile must divide H and be >= 2"
    th2 = 2 * tin
    n_tiles = H // tin
    out_dtype = x_nchw.dtype

    # NCHW -> channels-on-lanes kernel layouts (one fused HBM pass per tensor).
    # res's width axis is parity-split: res_k[b, r, p, w, ci] = res[b, ci, r, 2w+p],
    # so the kernel never has to interleave even/odd output columns.
    x_k = jnp.transpose(x_nchw, (0, 2, 3, 1))                               # (B, H, W, Cd)
    res_k = jnp.transpose(res_nchw.reshape(B, Cin, H2, W, 2), (0, 2, 4, 3, 1))
    res_k = res_k.astype(conv_dtype)                                        # (B, H2, 2, W, Cin)
    w_mat = jnp.transpose(w_conv[:, :, 0, 0], (1, 0)).astype(conv_dtype)    # (Cin, Cd)

    out = pl.pallas_call(
        wf_kernel,
        out_shape=jax.ShapeDtypeStruct((B, H2, 2, W, Cd), out_dtype),
        grid_spec=pltpu.PrefetchScalarGridSpec(
            num_scalar_prefetch=0,
            grid=(B, n_tiles),
            in_specs=[
                pl.BlockSpec((1, H, W, Cd), lambda b, t: (b, 0, 0, 0)),        # resident per b
                pl.BlockSpec((1, th2, 2, W, Cin), lambda b, t: (b, t, 0, 0, 0)),
                pl.BlockSpec((Cin, Cd), lambda b, t: (0, 0)),                  # resident
            ],
            out_specs=pl.BlockSpec((1, th2, 2, W, Cd), lambda b, t: (b, t, 0, 0, 0)),
        ),
        compiler_params=pltpu.CompilerParams(
            dimension_semantics=("parallel", "parallel"),
            vmem_limit_bytes=48 * 1024 * 1024),
    )(x_k, res_k, w_mat)

    # Undo the parity split; this rides on the kernel-layout -> NCHW transpose
    # we need anyway (one fused HBM pass).
    return jnp.transpose(out, (0, 4, 1, 3, 2)).reshape(B, Cd, H2, W2)


# ----------------------------------------------------------------------------
# Plain-JAX reference (full f32) for a sanity check
# ----------------------------------------------------------------------------
def _bilinear_matrix(n: int) -> jnp.ndarray:
    """U (2n, n): up = U @ signal, matching F.interpolate(scale_factor=2,
    mode='bilinear', align_corners=False)."""
    o = 2 * n
    out_idx = jnp.arange(o, dtype=jnp.float32)
    src = (out_idx + 0.5) / 2.0 - 0.5
    i0 = jnp.floor(src)
    frac = src - i0
    i0c = jnp.clip(i0, 0, n - 1).astype(jnp.int32)
    i1c = jnp.clip(i0 + 1, 0, n - 1).astype(jnp.int32)
    return ((1.0 - frac)[:, None] * jax.nn.one_hot(i0c, n, dtype=jnp.float32)
            + frac[:, None] * jax.nn.one_hot(i1c, n, dtype=jnp.float32))


def wf_reference(x_nchw, res_nchw, w_conv):
    B, Cd, H, W = x_nchw.shape
    uh = _bilinear_matrix(H)
    uw = _bilinear_matrix(W)
    up = jnp.einsum('Oh,bchw->bcOw', uh, x_nchw)
    up = jnp.einsum('Pw,bchw->bchP', uw, up)
    w = w_conv[:, :, 0, 0]                          # (Cd, Cin)
    y = jnp.einsum('oc,bchw->bohw', w, res_nchw)
    return y + up


if __name__ == "__main__":
    key = jax.random.PRNGKey(0)
    k1, k2, k3 = jax.random.split(key, 3)

    B, Cin, Cd, H, W = 2, 4, 4, 16, 16   # WF defaults are 128/128; small here
    x = jax.random.normal(k1, (B, Cd, H, W), dtype=jnp.float32)
    res = jax.random.normal(k2, (B, Cin, 2 * H, 2 * W), dtype=jnp.float32)
    # deterministic 1x1 conv weight, PyTorch layout (out, in, 1, 1), no bias
    w_conv = (jax.random.normal(k3, (Cd, Cin, 1, 1), dtype=jnp.float32)
              * (1.0 / np.sqrt(Cin)))

    # row_tile=4 -> 4 row tiles per image: exercises the first/interior/last
    # tile halo clamping and the row/column interleave logic.
    out = wf_forward(x, res, w_conv, row_tile=4)
    out = jax.block_until_ready(out)

    ref = jax.block_until_ready(wf_reference(x, res, w_conv))
    # Conv runs in bf16 (f32 accumulation) inside the kernel; the upsample path
    # is exact f32, so only the conv term carries bf16 rounding error.
    np.testing.assert_allclose(np.asarray(out), np.asarray(ref),
                               rtol=5e-2, atol=5e-2)
    assert out.shape == (B, Cd, 2 * H, 2 * W)
    print("KERNEL_OK")
</pallas_src>

<mosaic_0001>
module attributes {stable_mosaic.version = 11 : i64} {
  func.func @wf_kernel(%arg0: i32, %arg1: i32, %arg2: memref<1x16x16x4xf32, #tpu.memory_space<vmem>>, %arg3: memref<1x8x2x16x4xbf16, #tpu.memory_space<vmem>>, %arg4: memref<4x4xbf16, #tpu.memory_space<vmem>>, %arg5: memref<1x8x2x16x4xf32, #tpu.memory_space<vmem>>) attributes {dimension_semantics = [#tpu.dimension_semantics<parallel>, #tpu.dimension_semantics<parallel>], iteration_bounds = array<i64: 2, 4>, scalar_prefetch = 0 : i64, scratch_operands = 0 : i64, tpu.core_type = #tpu.core_type<tc>, window_params = [{transform_indices = @transform_0, window_bounds = array<i64: 1, 16, 16, 4>}, {transform_indices = @transform_1, window_bounds = array<i64: 1, 8, 2, 16, 4>}, {pipeline_mode = #tpu.pipeline_mode<synchronous>, transform_indices = @transform_2, window_bounds = array<i64: 4, 4>}, {transform_indices = @transform_3, window_bounds = array<i64: 1, 8, 2, 16, 4>}]} {
    %c4_i32 = arith.constant 4 : i32
    %0 = arith.muli %arg1, %c4_i32 : i32
    %1 = tpu.assume_multiple %0, 4 : i32
    %c0 = arith.constant 0 : index
    %c0_0 = arith.constant 0 : index
    %c0_1 = arith.constant 0 : index
    %c0_2 = arith.constant 0 : index
    %c0_3 = arith.constant 0 : index
    %2 = vector.load %arg3[%c0, %c0_0, %c0_1, %c0_2, %c0_3] : memref<1x8x2x16x4xbf16, #tpu.memory_space<vmem>>, vector<1x8x2x16x4xbf16>
    %3 = vector.shape_cast %2 : vector<1x8x2x16x4xbf16> to vector<8x2x16x4xbf16>
    %4 = vector.shape_cast %3 : vector<8x2x16x4xbf16> to vector<256x4xbf16>
    %c0_4 = arith.constant 0 : index
    %c0_5 = arith.constant 0 : index
    %5 = vector.load %arg4[%c0_4, %c0_5] : memref<4x4xbf16, #tpu.memory_space<vmem>>, vector<4x4xbf16>
    %cst = arith.constant dense<0.000000e+00> : vector<256x4xf32>
    %6 = tpu.matmul %4, %5, %cst {dimension_numbers = #tpu.dot_dimension_numbers<[1], [0], [0], [1], [0, 0, 1, 1], [], []>} : vector<256x4xbf16>, vector<4x4xbf16>, vector<256x4xf32> -> vector<256x4xf32>
    %7 = vector.shape_cast %6 : vector<256x4xf32> to vector<8x2x16x4xf32>
    %c0_6 = arith.constant 0 : index
    %8 = arith.index_cast %1 : i32 to index
    %c0_7 = arith.constant 0 : index
    %c0_8 = arith.constant 0 : index
    %9 = vector.load %arg2[%c0_6, %8, %c0_7, %c0_8] : memref<1x16x16x4xf32, #tpu.memory_space<vmem>>, vector<1x4x16x4xf32>
    %10 = vector.shape_cast %9 : vector<1x4x16x4xf32> to vector<4x16x4xf32>
    %c1_i32 = arith.constant 1 : i32
    %11 = arith.subi %1, %c1_i32 : i32
    %c0_i32 = arith.constant 0 : i32
    %12 = arith.maxsi %11, %c0_i32 : i32
    %c0_9 = arith.constant 0 : index
    %13 = arith.index_cast %12 : i32 to index
    %c0_10 = arith.constant 0 : index
    %c0_11 = arith.constant 0 : index
    %14 = vector.load %arg2[%c0_9, %13, %c0_10, %c0_11] : memref<1x16x16x4xf32, #tpu.memory_space<vmem>>, vector<1x1x16x4xf32>
    %15 = vector.shape_cast %14 : vector<1x1x16x4xf32> to vector<1x16x4xf32>
    %c4_i32_12 = arith.constant 4 : i32
    %16 = arith.addi %1, %c4_i32_12 : i32
    %c15_i32 = arith.constant 15 : i32
    %17 = arith.minsi %16, %c15_i32 : i32
    %c0_13 = arith.constant 0 : index
    %18 = arith.index_cast %17 : i32 to index
    %c0_14 = arith.constant 0 : index
    %c0_15 = arith.constant 0 : index
    %19 = vector.load %arg2[%c0_13, %18, %c0_14, %c0_15] : memref<1x16x16x4xf32, #tpu.memory_space<vmem>>, vector<1x1x16x4xf32>
    %20 = vector.shape_cast %19 : vector<1x1x16x4xf32> to vector<1x16x4xf32>
    %21 = vector.extract_strided_slice %10 {offsets = [0, 0, 0], sizes = [3, 16, 4], strides = [1, 1, 1]} : vector<4x16x4xf32> to vector<3x16x4xf32>
    %22 = tpu.concatenate %15, %21 in 0 : vector<1x16x4xf32>, vector<3x16x4xf32> -> vector<4x16x4xf32>
    %23 = vector.extract_strided_slice %10 {offsets = [1, 0, 0], sizes = [3, 16, 4], strides = [1, 1, 1]} : vector<4x16x4xf32> to vector<3x16x4xf32>
    %24 = tpu.concatenate %23, %20 in 0 : vector<3x16x4xf32>, vector<1x16x4xf32> -> vector<4x16x4xf32>
    %cst_16 = arith.constant 2.500000e-01 : f32
    %25 = vector.broadcast %cst_16 : f32 to vector<4x16x4xf32>
    %26 = arith.mulf %25, %22 : vector<4x16x4xf32>
    %cst_17 = arith.constant 7.500000e-01 : f32
    %27 = vector.broadcast %cst_17 : f32 to vector<4x16x4xf32>
    %28 = arith.mulf %27, %10 : vector<4x16x4xf32>
    %29 = arith.addf %26, %28 : vector<4x16x4xf32>
    %cst_18 = arith.constant 7.500000e-01 : f32
    %30 = vector.broadcast %cst_18 : f32 to vector<4x16x4xf32>
    %31 = arith.mulf %30, %10 : vector<4x16x4xf32>
    %cst_19 = arith.constant 2.500000e-01 : f32
    %32 = vector.broadcast %cst_19 : f32 to vector<4x16x4xf32>
    %33 = arith.mulf %32, %24 : vector<4x16x4xf32>
    %34 = arith.addf %31, %33 : vector<4x16x4xf32>
    %35 = vector.shape_cast %29 : vector<4x16x4xf32> to vector<4x1x16x4xf32>
    %36 = vector.shape_cast %34 : vector<4x16x4xf32> to vector<4x1x16x4xf32>
    %37 = tpu.concatenate %35, %36 in 1 : vector<4x1x16x4xf32>, vector<4x1x16x4xf32> -> vector<4x2x16x4xf32>
    %38 = vector.shape_cast %37 : vector<4x2x16x4xf32> to vector<8x16x4xf32>
    %39 = vector.extract_strided_slice %38 {offsets = [0, 0, 0], sizes = [8, 1, 4], strides = [1, 1, 1]} : vector<8x16x4xf32> to vector<8x1x4xf32>
    %40 = vector.extract_strided_slice %38 {offsets = [0, 0, 0], sizes = [8, 15, 4], strides = [1, 1, 1]} : vector<8x16x4xf32> to vector<8x15x4xf32>
    %41 = tpu.concatenate %39, %40 in 1 : vector<8x1x4xf32>, vector<8x15x4xf32> -> vector<8x16x4xf32>
    %42 = vector.extract_strided_slice %38 {offsets = [0, 1, 0], sizes = [8, 15, 4], strides = [1, 1, 1]} : vector<8x16x4xf32> to vector<8x15x4xf32>
    %43 = vector.extract_strided_slice %38 {offsets = [0, 15, 0], sizes = [8, 1, 4], strides = [1, 1, 1]} : vector<8x16x4xf32> to vector<8x1x4xf32>
    %44 = tpu.concatenate %42, %43 in 1 : vector<8x15x4xf32>, vector<8x1x4xf32> -> vector<8x16x4xf32>
    %cst_20 = arith.constant 2.500000e-01 : f32
    %45 = vector.broadcast %cst_20 : f32 to vector<8x16x4xf32>
    %46 = arith.mulf %45, %41 : vector<8x16x4xf32>
    %cst_21 = arith.constant 7.500000e-01 : f32
    %47 = vector.broadcast %cst_21 : f32 to vector<8x16x4xf32>
    %48 = arith.mulf %47, %38 : vector<8x16x4xf32>
    %49 = arith.addf %46, %48 : vector<8x16x4xf32>
    %cst_22 = arith.constant 7.500000e-01 : f32
    %50 = vector.broadcast %cst_22 : f32 to vector<8x16x4xf32>
    %51 = arith.mulf %50, %38 : vector<8x16x4xf32>
    %cst_23 = arith.constant 2.500000e-01 : f32
    %52 = vector.broadcast %cst_23 : f32 to vector<8x16x4xf32>
    %53 = arith.mulf %52, %44 : vector<8x16x4xf32>
    %54 = arith.addf %51, %53 : vector<8x16x4xf32>
    %55 = vector.shape_cast %49 : vector<8x16x4xf32> to vector<8x1x16x4xf32>
    %56 = vector.shape_cast %54 : vector<8x16x4xf32> to vector<8x1x16x4xf32>
    %57 = tpu.concatenate %55, %56 in 1 : vector<8x1x16x4xf32>, vector<8x1x16x4xf32> -> vector<8x2x16x4xf32>
    %58 = arith.addf %7, %57 : vector<8x2x16x4xf32>
    %c0_24 = arith.constant 0 : index
    %c0_25 = arith.constant 0 : index
    %c0_26 = arith.constant 0 : index
    %c0_27 = arith.constant 0 : index
    %c0_28 = arith.constant 0 : index
    %59 = vector.load %arg5[%c0_24, %c0_25, %c0_26, %c0_27, %c0_28] : memref<1x8x2x16x4xf32, #tpu.memory_space<vmem>>, vector<1x8x2x16x4xf32>
    %60 = vector.shape_cast %59 : vector<1x8x2x16x4xf32> to vector<8x2x16x4xf32>
    %61 = vector.shape_cast %58 : vector<8x2x16x4xf32> to vector<1x8x2x16x4xf32>
    tpu.vector_store %arg5[%c0_24, %c0_25, %c0_26, %c0_27, %c0_28], %61 {strides = array<i32>} : memref<1x8x2x16x4xf32, #tpu.memory_space<vmem>>, vector<1x8x2x16x4xf32>,
    return
  }
  func.func @transform_0(%arg0: i32, %arg1: i32) -> (i32, i32, i32, i32) {
    %c0_i32 = arith.constant 0 : i32
    %c0_i32_0 = arith.constant 0 : i32
    %c0_i32_1 = arith.constant 0 : i32
    %c0_i32_2 = arith.constant 0 : i32
    return %arg0, %c0_i32, %c0_i32_0, %c0_i32_1 : i32, i32, i32, i32
  }
  func.func @transform_1(%arg0: i32, %arg1: i32) -> (i32, i32, i32, i32, i32) {
    %c0_i32 = arith.constant 0 : i32
    %c0_i32_0 = arith.constant 0 : i32
    %c0_i32_1 = arith.constant 0 : i32
    %c0_i32_2 = arith.constant 0 : i32
    return %arg0, %arg1, %c0_i32, %c0_i32_0, %c0_i32_1 : i32, i32, i32, i32, i32
  }
  func.func @transform_2(%arg0: i32, %arg1: i32) -> (i32, i32) {
    %c0_i32 = arith.constant 0 : i32
    %c0_i32_0 = arith.constant 0 : i32
    %c0_i32_1 = arith.constant 0 : i32
    return %c0_i32, %c0_i32_0 : i32, i32
  }
  func.func @transform_3(%arg0: i32, %arg1: i32) -> (i32, i32, i32, i32, i32) {
    %c0_i32 = arith.constant 0 : i32
    %c0_i32_0 = arith.constant 0 : i32
    %c0_i32_1 = arith.constant 0 : i32
    %c0_i32_2 = arith.constant 0 : i32
    return %arg0, %arg1, %c0_i32, %c0_i32_0, %c0_i32_1 : i32, i32, i32, i32, i32
  }
}

</mosaic_0001>

<bundles_post_ra>
// kernel: tpu_custom_call.1
= control target key start
LH: loop header
LB: loop body
LE: loop exit
PB: predicated region body
PF: predicated region fallthrough
CT: control target
= control target key end

     0   :  { %s1226_s12 = smov 0   ;;  %s1228_s13 = smov 0   ;;  %s1587_s0 = inlined_call_operand.vmem [shape: f32[2,16,16,4], index: 0, kind: input, shape index: {}]   ;;  %s1588_s1 = inlined_call_operand.vmem [shape: bf16[2,32,2,16,4], index: 1, kind: input, shape index: {}]   ;;  %s1589_s2 = inlined_call_operand.vmem [shape: bf16[4,4], index: 2, kind: input, shape index: {}]   ;;  %s1590_s3 = inlined_call_operand.vmem [shape: f32[2,32,2,16,4], index: 3, kind: output, shape index: {}]  }
   0x1   :  { %s1230_s14 = smov 0   ;;  %s1232_s15 = smov 0  }
   0x2   :  { %s1234_s16 = smov 0  }
   0x3 LB: > { %s22_s17 = sadd.s32 1, %s1196_s14  ;;  %s25_s18 = sadd.s32 1, %s1200_s15  ;;  %s1204_s16 = sphi %s1234_s16, %s13_s16   ;;  %s1200_s15 = sphi %s1232_s15, %s1594_s15   ;;  %s1196_s14 = sphi %s1230_s14, %s1593_s14   ;;  %s1192_s13 = sphi %s1228_s13, %s1592_s13   ;;  %s1188_s12 = sphi %s1226_s12, %s1591_s12  }
   0x4   : > { %p23_p0 = scmp.ge.s32.totalorder %s22_s17, 4  ;;  %p1003_p1 = scmp.ge.s32.totalorder %s1204_s16, 1 }
   0x5   : > { %p169_p2 = scmp.lt.s32.totalorder %s1204_s16, 9 }
   0x6   : > { %s1596_s17 = smov (%p23_p0, %s22_s17), 0  ;;  %s1598_s18 = smov (!%p23_p0, %s25_s18), %s1200_s15 }
   0x7   : > { %p170_p3 = pnand %p1003_p1, %p169_p2  ;;  %p27_p4 = scmp.ge.s32.totalorder %s1598_s18, 2 }
   0x8   : > { %p208_p5 = scmp.lt.s32.totalorder (!%p170_p3), %s1192_s13, 1  ;;  %s1006_s21 = sshll.u32 (!%p170_p3), %s1188_s12, 3 }
   0x9   : > { %s1600_s18 = smov (%p27_p4, %s1598_s18), 0  ;;  %173 = sbr.rel (%p170_p3) target bundleno = 248 (0xf8), region = 32 }
   0xa   : > { %p216_p6 = scmp.lt.s32.totalorder (!%p170_p3), %s1006_s21, 31  ;;  %s1014_s29 = sshll.u32 (!%p170_p3), %s1188_s12, 2 }
   0xb   : > { %s1048_s30 = sadd.s32 (!%p170_p3), 4294967295, %s1014_s29  ;;  %s1054_s8 = sshll.u32 (!%p170_p3), %s1188_s12, 6 }
   0xc   : > { %p575_p7 = scmp.gt.s32.totalorder (!%p170_p3), %s1048_s30, 0 }
   0xe   : > { %v269_v0 = vld [vmem:[%s1589_s2] sm:$0x3]  ;;  %vm399_vm0 = vcmask 1041408   ;;  %s1602_s13 = smov (!%p208_p5, %s1192_s13), 1  ;;  %s1604_s21 = smov (!%p216_p6, %s1006_s21), 31  ;;  %vm350_vm1 = vcmask 31744  }
   0xf   : > { %1108 = vmatprep.subr.msk.bf16.mxu0 %vm399_vm0, %v269_v0  ;;  %1109 = vmatprep.subr.msk.bf16.mxu1 %vm399_vm0, %v269_v0  ;;  %v401_v1 = vsel %vm399_vm0, %v269_v0, 0  ;;  %s1008_s22 = sshll.u32 %s1602_s13, 7  ;;  %s1007_s23 = sshll.u32 %s1604_s21, 2  ;;  %vm689_vm2 = vcmask 1046528   ;;  %vm640_vm3 = vcmask 1040384  }
  0x10   : > { %1073 = vmatpush3.bf16.msra.mxu0 %v401_v1  ;;  %1107 = vmatpush3.bf16.msra.mxu1 %v401_v1  ;;  %s1265_s24 = sadd.s32 %s1008_s22, %s1007_s23  ;;  %s1053_s4 = sshll.u32 %s1602_s13, 8 }
  0x11   : > { %s1009_s25 = sshll.u32 %s1265_s24, 2  ;;  %s1606_s30 = smov (!%p575_p7, %s1048_s30), 0 }
  0x12   : > { %s1271_s28 = scalar_lea.vmem %s1588_s1, %s1009_s25  ;;  %s1312_s7 = scalar_lea.vmem %s1587_s0, %s1053_s4 }
  0x13   : > { %v1150_v2 = vld [vmem:[%s1271_s28] sm:$0xff]   ;;  %v1152_v4 = vld [vmem:[%s1271_s28 + $0x8] sm:$0xff]   ;;  %v1154_v6 = vld [vmem:[%s1271_s28 + $0x10] sm:$0xff]   ;;  %s1049_s9 = sshll.u32 %s1606_s30, 4  ;;  %s1316_s10 = scalar_lea.vmem %s1312_s7, %s1054_s8 }
  0x14   : > { %v1151_v3 = vld [vmem:[%s1271_s28 + $0x40] sm:$0xff]   ;;  %1074 = vmatprep.mubr.msk.bf16.mxu0 %vm350_vm1, %v1150_v2  ;;  %v1153_v5 = vld [vmem:[%s1271_s28 + $0x48] sm:$0xff]   ;;  %v1155_v7 = vld [vmem:[%s1271_s28 + $0x50] sm:$0xff]   ;;  %s578_s11 = scalar_lea.vmem %s1312_s7, %s1049_s9  ;;  %s581_s13 = sadd.s32 4, %s1014_s29 }
  0x15   : > { %1090 = vmatprep.mubr.msk.bf16.mxu1 %vm350_vm1, %v1151_v3  ;;  %1075 = vmatmul.mubr.msk.bf16.vlgmr.msra.gmra.mxu0 %vm350_vm1, %v1152_v4  ;;  %v1156_v8 = vld [vmem:[%s1271_s28 + $0x18] sm:$0xff]   ;;  %v1158_v10 = vld [vmem:[%s1271_s28 + $0x20] sm:$0xff]   ;;  %v1160_v12 = vld [vmem:[%s1271_s28 + $0x28] sm:$0xff]   ;;  %p582_p8 = scmp.lt.s32.totalorder %s581_s13, 15  ;;  %s1013_s19 = sshll.u32 %s1265_s24, 3 }
  0x16   : > { %1091 = vmatmul.mubr.msk.bf16.vlgmr.msra.gmra.mxu1 %vm350_vm1, %v1153_v5  ;;  %1078 = vmatprep.mubr.msk.bf16.mxu0 %vm350_vm1, %v1154_v6  ;;  %v1157_v9 = vld [vmem:[%s1271_s28 + $0x58] sm:$0xff]   ;;  %v1159_v11 = vld [vmem:[%s1271_s28 + $0x60] sm:$0xff]   ;;  %v1161_v13 = vld [vmem:[%s1271_s28 + $0x68] sm:$0xff]   ;;  %s1422_s23 = scalar_lea.vmem %s1590_s3, %s1013_s19 }
  0x17   : > { %1094 = vmatprep.mubr.msk.bf16.mxu1 %vm350_vm1, %v1155_v7  ;;  %v1162_v14 = vld [vmem:[%s1271_s28 + $0x30] sm:$0xff]   ;;  %v1164_v16 = vld [vmem:[%s1271_s28 + $0x38] sm:$0xff]   ;;  %v1320_v18 = vld [vmem:[%s1316_s10] sm:$0xff]  ;;  %s1608_s13 = smov (!%p582_p8, %s581_s13), 15 }
  0x18   : > { %v1163_v15 = vld [vmem:[%s1271_s28 + $0x70] sm:$0xff]   ;;  %v1165_v17 = vld [vmem:[%s1271_s28 + $0x78] sm:$0xff]   ;;  %v1323_v19 = vld [vmem:[%s1316_s10 + $0x8] sm:$0xff]  ;;  %v596_v28 = vmul.f32 0.75, %v1320_v18  ;;  %s1050_s12 = sshll.u32 %s1608_s13, 4 }
  0x19   : > { %v579_v20 = vld [vmem:[%s578_s11] sm:$0xff]  ;;  %v580_v21 = vld [vmem:[%s578_s11 + $0x8] sm:$0xff]  ;;  %v1326_v22 = vld [vmem:[%s1316_s10 + $0x10] sm:$0xff]  ;;  %v597_v29 = vmul.f32 0.75, %v1323_v19  ;;  %s585_s20 = scalar_lea.vmem %s1312_s7, %s1050_s12 }
  0x1a   : > { %v1329_v23 = vld [vmem:[%s1316_s10 + $0x18] sm:$0xff]  ;;  %v1332_v24 = vld [vmem:[%s1316_s10 + $0x20] sm:$0xff]  ;;  %v1335_v25 = vld [vmem:[%s1316_s10 + $0x28] sm:$0xff]  ;;  %v588_v26 = vmul.f32 0.25, %v579_v20  ;;  %v589_v27 = vmul.f32 0.25, %v580_v21  ;;  %v592_v30 = vmul.f32 0.25, %v1326_v22 }
  0x1b   : > { %v593_v31 = vmul.f32 0.25, %v1329_v23  ;;  %v600_v32 = vmul.f32 0.75, %v1332_v24  ;;  %v601_v33 = vmul.f32 0.75, %v1335_v25  ;;  %v1344_v44 = vld [vmem:[%s1316_s10 + $0x30] sm:$0xff]  ;;  %v1347_v45 = vld [vmem:[%s1316_s10 + $0x38] sm:$0xff] }
  0x1c   : > { %v604_v34 = vadd.f32 %v596_v28, %v588_v26  ;;  %v605_v35 = vadd.f32 %v597_v29, %v589_v27  ;;  %v616_v50 = vadd.f32 %v596_v28, %v592_v30  ;;  %v612_v52 = vmul.f32 0.25, %v1344_v44 }
  0x1d   : > { %1079 = vmatmul.mubr.msk.bf16.gmra.mxu0 %vm350_vm1, %v1156_v8  ;;  %v608_v36 = vadd.f32 %v600_v32, %v592_v30  ;;  %v609_v37 = vadd.f32 %v601_v33, %v593_v31  ;;  %v617_v51 = vadd.f32 %v597_v29, %v593_v31  ;;  %v613_v53 = vmul.f32 0.25, %v1347_v45 }
  0x1e   : > { %1095 = vmatmul.mubr.msk.bf16.gmra.mxu1 %vm350_vm1, %v1157_v9  ;;  %1082 = vmatprep.mubr.msk.bf16.mxu0 %vm350_vm1, %v1158_v10  ;;  %v690_v38 = vrot.slane %v604_v34, 1  ;;  %v691_v39 = vrot.slane %v605_v35, 1  ;;  %v641_v42 = vrot.slane %v604_v34, 7  ;;  %v754_v54 = vmul.f32 0.75, %v604_v34 }
  0x1f   : > { %1098 = vmatprep.mubr.msk.bf16.mxu1 %vm350_vm1, %v1159_v11  ;;  %v702_v40 = vrot.slane %v608_v36, 1  ;;  %v703_v41 = vrot.slane %v609_v37, 1  ;;  %v653_v43 = vrot.slane %v608_v36, 7  ;;  %v762_v56 = vmul.f32 0.75, %v608_v36 }
  0x20   : > { %v692_v46 = vsel %vm689_vm2, %v690_v38, %v691_v39  ;;  %v681_v48 = vsel %vm640_vm3, %v604_v34, %v641_v42  ;;  %v730_v60 = vsel %vm689_vm2, %v691_v39, %v605_v35  ;;  %v642_v61 = vrot.slane %v605_v35, 7 }
  0x21   : > { %v704_v47 = vsel %vm689_vm2, %v702_v40, %v703_v41  ;;  %v685_v49 = vsel %vm640_vm3, %v608_v36, %v653_v43  ;;  %v786_v55 = vmul.f32 0.25, %v692_v46  ;;  %v738_v58 = vmul.f32 0.25, %v681_v48 }
  0x22   : > { %v794_v57 = vmul.f32 0.25, %v704_v47  ;;  %v746_v59 = vmul.f32 0.25, %v685_v49  ;;  %v654_v62 = vrot.slane %v609_v37, 7  ;;  %v693_v63 = vrot.slane %v616_v50, 1 }
  0x23   : > { %v694_v0 = vrot.slane %v617_v51, 1  ;;  %v620_v1 = vadd.f32 %v612_v52, %v600_v32  ;;  %v621_v2 = vadd.f32 %v613_v53, %v601_v33  ;;  %v1358_v3 = vadd.f32 %v786_v55, %v754_v54 }
  0x24   : > { %v734_v4 = vsel %vm689_vm2, %v703_v41, %v609_v37  ;;  %v644_v5 = vrot.slane %v616_v50, 7  ;;  %v1361_v6 = vadd.f32 %v794_v57, %v762_v56  ;;  %v1363_v7 = vadd.f32 %v754_v54, %v738_v58 }
  0x25   : > { %1083 = vmatmul.mubr.msk.bf16.gmra.mxu0 %vm350_vm1, %v1160_v12  ;;  %v1365_v8 = vadd.f32 %v762_v56, %v746_v59  ;;  %v755_v9 = vmul.f32 0.75, %v605_v35  ;;  %v787_v10 = vmul.f32 0.25, %v730_v60  ;;  %v763_v11 = vmul.f32 0.75, %v609_v37 }
  0x26   : > { %1099 = vmatmul.mubr.msk.bf16.gmra.mxu1 %vm350_vm1, %v1161_v13  ;;  %1086 = vmatprep.mubr.msk.bf16.mxu0 %vm350_vm1, %v1162_v14  ;;  %v643_v12 = vsel %vm640_vm3, %v641_v42, %v642_v61  ;;  %v655_v13 = vsel %vm640_vm3, %v653_v43, %v654_v62  ;;  %v695_v14 = vsel %vm689_vm2, %v693_v63, %v694_v0  ;;  %v645_v26 = vrot.slane %v617_v51, 7 }
  0x27   : > { %1102 = vmatprep.mubr.msk.bf16.mxu1 %vm350_vm1, %v1163_v15  ;;  %v705_v15 = vrot.slane %v620_v1, 1  ;;  %v682_v20 = vsel %vm640_vm3, %v616_v50, %v644_v5  ;;  %v731_v21 = vsel %vm689_vm2, %v694_v0, %v617_v51  ;;  %v657_v27 = vrot.slane %v621_v2, 7 }
  0x28   : > { %v590_v28 = vmul.f32 0.25, %v1320_v18  ;;  %v591_v29 = vmul.f32 0.25, %v1323_v19  ;;  %v598_v30 = vmul.f32 0.75, %v1326_v22  ;;  %v599_v31 = vmul.f32 0.75, %v1329_v23 }
  0x29   : > { %v795_v32 = vmul.f32 0.25, %v734_v4  ;;  %v739_v33 = vmul.f32 0.25, %v643_v12  ;;  %v747_v34 = vmul.f32 0.25, %v655_v13  ;;  %v756_v35 = vmul.f32 0.75, %v616_v50  ;;  %v587_v12 = vld [vmem:[%s585_s20 + $0x8] sm:$0xff] }
  0x2a   : > { %v788_v36 = vmul.f32 0.25, %v695_v14  ;;  %v764_v37 = vmul.f32 0.75, %v620_v1  ;;  %v757_v39 = vmul.f32 0.75, %v617_v51  ;;  %v740_v19 = vmul.f32 0.25, %v682_v20 }
  0x2b   : > { %v789_v40 = vmul.f32 0.25, %v731_v21  ;;  %v646_v23 = vsel %vm640_vm3, %v644_v5, %v645_v26  ;;  %v1384_v42 = vadd.f32 %v598_v30, %v590_v28  ;;  %v1386_v43 = vadd.f32 %v599_v31, %v591_v29 }
  0x2c   : > { %v594_v46 = vmul.f32 0.25, %v1332_v24  ;;  %v595_v47 = vmul.f32 0.25, %v1335_v25  ;;  %v1391_v48 = vmul.f32 0.75, %v1344_v44  ;;  %v1394_v49 = vmul.f32 0.75, %v1347_v45 }
  0x2d   : > { %1087 = vmatmul.mubr.msk.bf16.gmra.mxu0 %vm350_vm1, %v1164_v16  ;;  %v706_v16 = vrot.slane %v621_v2, 1  ;;  %v765_v52 = vmul.f32 0.75, %v621_v2  ;;  %v803_v54 = vadd.f32 %v787_v10, %v755_v9  ;;  %v811_v55 = vadd.f32 %v795_v32, %v763_v11 }
  0x2e   : > { %1103 = vmatmul.mubr.msk.bf16.gmra.mxu1 %vm350_vm1, %v1165_v17  ;;  %v656_v17 = vrot.slane %v620_v1, 7  ;;  %v741_v56 = vmul.f32 0.25, %v646_v23  ;;  %v771_v24 = vadd.f32 %v755_v9, %v739_v33  ;;  %v779_v58 = vadd.f32 %v763_v11, %v747_v34  ;;  %v586_v11 = vld [vmem:[%s585_s20] sm:$0xff] }
  0x2f   : > { %v707_v18 = vsel %vm689_vm2, %v705_v15, %v706_v16  ;;  %v735_v22 = vsel %vm689_vm2, %v706_v16, %v621_v2  ;;  %v696_v25 = vrot.slane %v1384_v42, 1  ;;  %v697_v44 = vrot.slane %v1386_v43, 1 }
  0x30   : > { %v686_v38 = vsel %vm640_vm3, %v620_v1, %v656_v17  ;;  %v658_v41 = vsel %vm640_vm3, %v656_v17, %v657_v27  ;;  %v796_v50 = vmul.f32 0.25, %v707_v18  ;;  %v797_v53 = vmul.f32 0.25, %v735_v22 }
  0x31   : > { %v748_v51 = vmul.f32 0.25, %v686_v38  ;;  %v749_v57 = vmul.f32 0.25, %v658_v41  ;;  %v1401_v59 = vadd.f32 %v788_v36, %v756_v35  ;;  %v1403_v45 = vadd.f32 %v789_v40, %v757_v39 }
  0x32   : > { %v1406_v60 = vadd.f32 %v1391_v48, %v594_v46  ;;  %v1409_v61 = vadd.f32 %v1394_v49, %v595_v47  ;;  %v1411_v62 = vadd.f32 %v796_v50, %v764_v37  ;;  %v1413_v63 = vadd.f32 %v756_v35, %v740_v19 }
  0x33   : > { %v1415_v0 = vadd.f32 %v764_v37, %v748_v51  ;;  %v1417_v1 = vadd.f32 %v797_v53, %v765_v52  ;;  %v1424_v4 = vadd.f32 %v757_v39, %v741_v56  ;;  %v1426_v5 = vadd.f32 %v765_v52, %v749_v57 }
  0x34   : > { %v1428_v9 = vadd.f32 %v598_v30, %v594_v46  ;;  %v1430_v10 = vadd.f32 %v599_v31, %v595_v47  ;;  %v698_v15 = vsel %vm689_vm2, %v696_v25, %v697_v44  ;;  %v1435_v16 = vmul.f32 0.75, %v1384_v42 }
  0x35   : > { %v647_v17 = vrot.slane %v1384_v42, 7  ;;  %v708_v26 = vrot.slane %v1406_v60, 1  ;;  %v709_v27 = vrot.slane %v1409_v61, 1  ;;  %v659_v30 = vrot.slane %v1406_v60, 7 }
  0x36   : > { %v614_v31 = vmul.f32 0.25, %v586_v11  ;;  %v615_v32 = vmul.f32 0.25, %v587_v12  ;;  %v790_v34 = vmul.f32 0.25, %v698_v15  ;;  %v1451_v35 = vmul.f32 0.75, %v1386_v43 }
  0x37   : > { %v648_v36 = vrot.slane %v1386_v43, 7  ;;  %v766_v38 = vmul.f32 0.75, %v1406_v60  ;;  %v683_v39 = vsel %vm640_vm3, %v1384_v42, %v647_v17  ;;  %v710_v40 = vsel %vm689_vm2, %v708_v26, %v709_v27 }
  0x38   : > { %v736_v23 = vsel %vm689_vm2, %v709_v27, %v1409_v61  ;;  %v687_v42 = vsel %vm640_vm3, %v1406_v60, %v659_v30  ;;  %v1470_v46 = vadd.f32 %v614_v31, %v1391_v48  ;;  %v1473_v47 = vadd.f32 %v615_v32, %v1394_v49 }
  0x39   : > { %v806_v52 = vadd.f32 %v790_v34, %v1435_v16  ;;  %v1479_v53 = vmul.f32 0.75, %v1409_v61  ;;  %v798_v49 = vmul.f32 0.25, %v710_v40  ;;  %v742_v56 = vmul.f32 0.25, %v683_v39 }
  0x3a   : > { %v649_v57 = vsel %vm640_vm3, %v647_v17, %v648_v36  ;;  %v750_v25 = vmul.f32 0.25, %v687_v42  ;;  %v700_v60 = vrot.slane %v1430_v10, 1  ;;  %v711_v11 = vrot.slane %v1470_v46, 1 }
  0x3b   : > { %v712_v12 = vrot.slane %v1473_v47, 1  ;;  %v650_v17 = vrot.slane %v1428_v9, 7  ;;  %v774_v26 = vadd.f32 %v1435_v16, %v742_v56  ;;  %v662_v27 = vrot.slane %v1470_v46, 7 }
  0x3c   : > { %v760_v32 = vmul.f32 0.75, %v1428_v9 }
  0x3d   : > { %v684_v36 = vsel %vm640_vm3, %v1428_v9, %v650_v17  ;;  %v688_v39 = vsel %vm640_vm3, %v1470_v46, %v662_v27 }
  0xd5   : > { %v1076_v2 = vpop.f32.mrf.mxu0 }
  0xd6   : > { %v820_v13 = vadd.f32 %v1076_v2, %v1358_v3  ;;  %v1092_v14 = vpop.f32.mrf.mxu1  ;;  %v732_v3 = vsel %vm689_vm2, %v697_v44, %v1386_v43  ;;  %v799_v44 = vmul.f32 0.25, %v736_v23 }
  0xd7   : > { %v836_v20 = vadd.f32 %v1092_v14, %v1361_v6  ;;  %v437_v21 = vpop.f32.mrf.mxu0  ;;  %v791_v22 = vmul.f32 0.25, %v732_v3  ;;  %v743_v14 = vmul.f32 0.25, %v649_v57 }
  0xd8   : > { %852 = vst.msk [vmem:[%s1422_s23 + $0x10] sm:$0xff] %vm350_vm1, %v820_v13  ;;  %v818_v28 = vadd.f32 %v1363_v7, %v437_v21  ;;  %v501_v29 = vpop.f32.mrf.mxu1  ;;  %v814_v21 = vadd.f32 %v798_v49, %v766_v38 }
  0xd9   : > { %868 = vst.msk [vmem:[%s1422_s23 + $0x90] sm:$0xff] %vm350_vm1, %v836_v20  ;;  %v834_v6 = vadd.f32 %v1365_v8, %v501_v29  ;;  %v1077_v33 = vpop.f32.mrf.mxu0  ;;  %v699_v8 = vrot.slane %v1428_v9, 1  ;;  %v807_v2 = vadd.f32 %v791_v22, %v1451_v35  ;;  %v815_v29 = vadd.f32 %v799_v44, %v1479_v53 }
  0xda   : > { %850 = vst.msk [vmem:[%s1422_s23] sm:$0xff] %vm350_vm1, %v818_v28  ;;  %v821_v7 = vadd.f32 %v1077_v33, %v803_v54  ;;  %v1093_v37 = vpop.f32.mrf.mxu1  ;;  %v660_v54 = vrot.slane %v1409_v61, 7  ;;  %v782_v28 = vadd.f32 %v766_v38, %v750_v25  ;;  %v775_v34 = vadd.f32 %v1451_v35, %v743_v14 }
  0xdb   : > { %866 = vst.msk [vmem:[%s1422_s23 + $0x80] sm:$0xff] %vm350_vm1, %v834_v6  ;;  %v837_v18 = vadd.f32 %v1093_v37, %v811_v55  ;;  %v440_v19 = vpop.f32.mrf.mxu0  ;;  %v713_v6 = vsel %vm689_vm2, %v711_v11, %v712_v12  ;;  %v768_v9 = vmul.f32 0.75, %v1470_v46  ;;  %v752_v46 = vmul.f32 0.25, %v688_v39 }
  0xdc   : > { %853 = vst.msk [vmem:[%s1422_s23 + $0x18] sm:$0xff] %vm350_vm1, %v821_v7  ;;  %v819_v41 = vadd.f32 %v771_v24, %v440_v19  ;;  %v504_v43 = vpop.f32.mrf.mxu1  ;;  %v661_v15 = vsel %vm640_vm3, %v659_v30, %v660_v54  ;;  %v701_v30 = vsel %vm689_vm2, %v699_v8, %v700_v60  ;;  %v733_v19 = vsel %vm689_vm2, %v700_v60, %v1430_v10 }
  0xdd   : > { %869 = vst.msk [vmem:[%s1422_s23 + $0x98] sm:$0xff] %vm350_vm1, %v837_v18  ;;  %v835_v50 = vadd.f32 %v779_v58, %v504_v43  ;;  %v1080_v51 = vpop.f32.mrf.mxu0  ;;  %v751_v16 = vmul.f32 0.25, %v661_v15  ;;  %v792_v38 = vmul.f32 0.25, %v701_v30  ;;  %v800_v18 = vmul.f32 0.25, %v713_v6 }
  0xde   : > { %851 = vst.msk [vmem:[%s1422_s23 + $0x8] sm:$0xff] %vm350_vm1, %v819_v41  ;;  %v824_v48 = vadd.f32 %v1080_v51, %v1401_v59  ;;  %v1096_v55 = vpop.f32.mrf.mxu1  ;;  %v744_v41 = vmul.f32 0.25, %v684_v36  ;;  %v737_v43 = vsel %vm689_vm2, %v712_v12, %v1473_v47  ;;  %v761_v51 = vmul.f32 0.75, %v1430_v10 }
  0xdf   : > { %867 = vst.msk [vmem:[%s1422_s23 + $0x88] sm:$0xff] %vm350_vm1, %v835_v50  ;;  %v840_v24 = vadd.f32 %v1096_v55, %v1411_v62  ;;  %v453_v58 = vpop.f32.mrf.mxu0  ;;  %v783_v23 = vadd.f32 %v1479_v53, %v751_v16  ;;  %v808_v53 = vadd.f32 %v792_v38, %v760_v32  ;;  %v793_v55 = vmul.f32 0.25, %v733_v19 }
  0xe0   : > { %856 = vst.msk [vmem:[%s1422_s23 + $0x30] sm:$0xff] %vm350_vm1, %v824_v48  ;;  %v822_v59 = vadd.f32 %v1413_v63, %v453_v58  ;;  %v517_v61 = vpop.f32.mrf.mxu1  ;;  %v769_v58 = vmul.f32 0.75, %v1473_v47  ;;  %v776_v60 = vadd.f32 %v760_v32, %v744_v41  ;;  %v784_v11 = vadd.f32 %v768_v9, %v752_v46 }
  0xe1   : > { %872 = vst.msk [vmem:[%s1422_s23 + $0xb0] sm:$0xff] %vm350_vm1, %v840_v24  ;;  %v838_v62 = vadd.f32 %v1415_v0, %v517_v61  ;;  %v1081_v13 = vpop.f32.mrf.mxu0  ;;  %v816_v24 = vadd.f32 %v800_v18, %v768_v9 }
  0xe2   : > { %854 = vst.msk [vmem:[%s1422_s23 + $0x20] sm:$0xff] %vm350_vm1, %v822_v59  ;;  %v825_v63 = vadd.f32 %v1081_v13, %v1403_v45  ;;  %v1097_v20 = vpop.f32.mrf.mxu1  ;;  %v809_v13 = vadd.f32 %v793_v55, %v761_v51 }
  0xe3   : > { %870 = vst.msk [vmem:[%s1422_s23 + $0xa0] sm:$0xff] %vm350_vm1, %v838_v62  ;;  %v841_v0 = vadd.f32 %v1097_v20, %v1417_v1  ;;  %v456_v3 = vpop.f32.mrf.mxu0 }
  0xe4   : > { %857 = vst.msk [vmem:[%s1422_s23 + $0x38] sm:$0xff] %vm350_vm1, %v825_v63  ;;  %v823_v45 = vadd.f32 %v1424_v4, %v456_v3  ;;  %v520_v31 = vpop.f32.mrf.mxu1  ;;  %v651_v4 = vrot.slane %v1430_v10, 7  ;;  %v801_v10 = vmul.f32 0.25, %v737_v43 }
  0xe5   : > { %873 = vst.msk [vmem:[%s1422_s23 + $0xb8] sm:$0xff] %vm350_vm1, %v841_v0  ;;  %v839_v1 = vadd.f32 %v1426_v5, %v520_v31  ;;  %v1084_v33 = vpop.f32.mrf.mxu0  ;;  %v663_v5 = vrot.slane %v1473_v47, 7 }
  0xe6   : > { %855 = vst.msk [vmem:[%s1422_s23 + $0x28] sm:$0xff] %vm350_vm1, %v823_v45  ;;  %v828_v7 = vadd.f32 %v1084_v33, %v806_v52  ;;  %v1100_v37 = vpop.f32.mrf.mxu1  ;;  %v652_v52 = vsel %vm640_vm3, %v650_v17, %v651_v4  ;;  %v817_v17 = vadd.f32 %v801_v10, %v769_v58 }
  0xe7   : > { %871 = vst.msk [vmem:[%s1422_s23 + $0xa8] sm:$0xff] %vm350_vm1, %v839_v1  ;;  %v844_v8 = vadd.f32 %v1100_v37, %v814_v21  ;;  %v469_v35 = vpop.f32.mrf.mxu0  ;;  %v664_v49 = vsel %vm640_vm3, %v662_v27, %v663_v5  ;;  %v745_v59 = vmul.f32 0.25, %v652_v52 }
  0xe8   : > { %860 = vst.msk [vmem:[%s1422_s23 + $0x50] sm:$0xff] %vm350_vm1, %v828_v7  ;;  %v826_v40 = vadd.f32 %v774_v26, %v469_v35  ;;  %v533_v22 = vpop.f32.mrf.mxu1  ;;  %v753_v12 = vmul.f32 0.25, %v664_v49 }
  0xe9   : > { %876 = vst.msk [vmem:[%s1422_s23 + $0xd0] sm:$0xff] %vm350_vm1, %v844_v8  ;;  %v842_v42 = vadd.f32 %v782_v28, %v533_v22  ;;  %v1085_v50 = vpop.f32.mrf.mxu0  ;;  %v777_v21 = vadd.f32 %v761_v51, %v745_v59 }
  0xea   : > { %858 = vst.msk [vmem:[%s1422_s23 + $0x40] sm:$0xff] %vm350_vm1, %v826_v40  ;;  %v829_v54 = vadd.f32 %v1085_v50, %v807_v2  ;;  %v1101_v48 = vpop.f32.mrf.mxu1  ;;  %v785_v0 = vadd.f32 %v769_v58, %v753_v12 }
  0xeb   : > { %874 = vst.msk [vmem:[%s1422_s23 + $0xc0] sm:$0xff] %vm350_vm1, %v842_v42  ;;  %v845_v56 = vadd.f32 %v1101_v48, %v815_v29  ;;  %v472_v57 = vpop.f32.mrf.mxu0 }
  0xec   : > { %861 = vst.msk [vmem:[%s1422_s23 + $0x58] sm:$0xff] %vm350_vm1, %v829_v54  ;;  %v827_v25 = vadd.f32 %v775_v34, %v472_v57  ;;  %v536_v44 = vpop.f32.mrf.mxu1 }
  0xed   : > { %877 = vst.msk [vmem:[%s1422_s23 + $0xd8] sm:$0xff] %vm350_vm1, %v845_v56  ;;  %v843_v61 = vadd.f32 %v783_v23, %v536_v44  ;;  %v1088_v2 = vpop.f32.mrf.mxu0 }
  0xee   : > { %859 = vst.msk [vmem:[%s1422_s23 + $0x48] sm:$0xff] %vm350_vm1, %v827_v25  ;;  %v832_v47 = vadd.f32 %v1088_v2, %v808_v53  ;;  %v1104_v62 = vpop.f32.mrf.mxu1 }
  0xef   : > { %875 = vst.msk [vmem:[%s1422_s23 + $0xc8] sm:$0xff] %vm350_vm1, %v843_v61  ;;  %v848_v14 = vadd.f32 %v1104_v62, %v816_v24  ;;  %v485_v15 = vpop.f32.mrf.mxu0 }
  0xf0   : > { %864 = vst.msk [vmem:[%s1422_s23 + $0x70] sm:$0xff] %vm350_vm1, %v832_v47  ;;  %v830_v63 = vadd.f32 %v776_v60, %v485_v15  ;;  %v549_v20 = vpop.f32.mrf.mxu1 }
  0xf1   : > { %880 = vst.msk [vmem:[%s1422_s23 + $0xf0] sm:$0xff] %vm350_vm1, %v848_v14  ;;  %v846_v26 = vadd.f32 %v784_v11, %v549_v20  ;;  %v1089_v27 = vpop.f32.mrf.mxu0 }
  0xf2   : > { %862 = vst.msk [vmem:[%s1422_s23 + $0x60] sm:$0xff] %vm350_vm1, %v830_v63  ;;  %v833_v3 = vadd.f32 %v1089_v27, %v809_v13  ;;  %v1105_v28 = vpop.f32.mrf.mxu1 }
  0xf3   : > { %878 = vst.msk [vmem:[%s1422_s23 + $0xe0] sm:$0xff] %vm350_vm1, %v846_v26  ;;  %v849_v29 = vadd.f32 %v1105_v28, %v817_v17  ;;  %v488_v30 = vpop.f32.mrf.mxu0 }
  0xf4   : > { %865 = vst.msk [vmem:[%s1422_s23 + $0x78] sm:$0xff] %vm350_vm1, %v833_v3  ;;  %v831_v45 = vadd.f32 %v777_v21, %v488_v30  ;;  %v552_v31 = vpop.f32.mrf.mxu1 }
  0xf5   : > { %881 = vst.msk [vmem:[%s1422_s23 + $0xf8] sm:$0xff] %vm350_vm1, %v849_v29  ;;  %v847_v16 = vadd.f32 %v785_v0, %v552_v31 }
  0xf6   : > { %863 = vst.msk [vmem:[%s1422_s23 + $0x68] sm:$0xff] %vm350_vm1, %v831_v45 }
  0xf7   : > { %879 = vst.msk [vmem:[%s1422_s23 + $0xe8] sm:$0xff] %vm350_vm1, %v847_v16 }
  0xf8 PF: > { %s13_s16 = sadd.s32 1, %s1204_s16   ;;  %s1591_s12 = smov %s1196_s14 }
  0xf9   : > { %p10_p9 = scmp.ge.s32.totalorder %s13_s16, 10   ;;  %s1592_s13 = smov %s1200_s15 }
  0xfa   : > { %s1593_s14 = smov %s1596_s17  ;;  %s1594_s15 = smov %s1600_s18 }
  0xfb   :  { %12 = sbr.rel (!%p10_p9) target bundleno = 3 (0x3), region = 68 }

</bundles_post_ra>
